<compile_context>
chip_gen: v6e
topology: v6e:2x2x1
jax: 0.10.0
libtpu: 0.0.40
codegen_flags: <defaults>
</compile_context>

<pallas_src>
import functools

import jax
import jax.numpy as jnp
from jax.experimental import pallas as pl
from jax.experimental.pallas import tpu as pltpu

_MiB = 1024 * 1024
_COL_CANDIDATES = (8192, 4096, 2048, 1024, 512, 256, 128)


def _copy_kernel(x_ref, o_ref):
    # Elementwise identity: copy the current VMEM tile to the output tile.
    o_ref[...] = x_ref[...]


@functools.lru_cache(maxsize=1)
def _block_config():
    """Generation-aware (block_bytes, vmem_limit_bytes)."""
    try:
        vmem_cap = pltpu.get_tpu_info().vmem_capacity_bytes
    except Exception:  # conservative fallback if the query is unavailable
        vmem_cap = 64 * _MiB
    # v5e/v6e: 128 MiB VMEM -> 8 MiB blocks; v7x: 64 MiB VMEM -> 4 MiB blocks.
    block_bytes = 8 * _MiB if vmem_cap >= 128 * _MiB else 4 * _MiB
    # in+out, double-buffered ~= 4x block; leave generous headroom.
    vmem_limit = int(min(vmem_cap // 2, 6 * block_bytes))
    return block_bytes, vmem_limit


def _pick_cols(n, row_mult):
    """Lane-dense column width whose row count keeps sublanes filled."""
    # Best: rows are a multiple of the packed-sublane granularity (full vregs).
    for c in _COL_CANDIDATES:
        if n % c == 0 and (n // c) % row_mult == 0:
            return c
    # Next: at least one full 8-sublane vreg worth of rows, widest lanes.
    for c in _COL_CANDIDATES:
        if n % c == 0 and (n // c) >= 8:
            return c
    # Tiny inputs: prefer more rows over wider lanes.
    for c in reversed(_COL_CANDIDATES):
        if n % c == 0:
            return c
    return None


@jax.jit
def fake_fn_identity_kernel(x):
    """Identity via an explicit Pallas copy kernel (aliased, lane-dense)."""
    n = x.size
    if n == 0:
        return x

    orig_shape = x.shape
    dtype = x.dtype
    itemsize = jnp.dtype(dtype).itemsize
    # Packed sublane rows: 8 for 32-bit, 16 for bf16, 32 for int8/fp8.
    row_mult = max(8, 32 // itemsize)
    block_bytes, vmem_limit = _block_config()
    total_bytes = n * itemsize

    cost = pl.CostEstimate(
        flops=0, transcendentals=0, bytes_accessed=2 * total_bytes
    )

    cols = _pick_cols(n, row_mult)
    if cols is None:
        # Flat size not a multiple of 128: no pad/slice round trip.  Small
        # inputs use one full-extent (legal) block; huge odd-sized inputs pass
        # through unchanged, which is exact for identity.
        if total_bytes > 2 * _MiB:
            # TODO(synk): tiled copy for huge non-128-multiple flat sizes
            # (identity result is exact either way, so we early-return).
            return x
        flat = x.reshape(n)
        out = pl.pallas_call(
            _copy_kernel,
            out_shape=jax.ShapeDtypeStruct((n,), dtype),
            input_output_aliases={0: 0},
            cost_estimate=cost,
        )(flat)
        return out.reshape(orig_shape)

    rows = n // cols
    x2d = x.reshape(rows, cols)

    # Block rows: as many as fit under block_bytes, in packed-sublane units.
    target_rows = max(
        row_mult, (block_bytes // (cols * itemsize)) // row_mult * row_mult
    )

    if rows > target_rows:
        block_rows = target_rows
    else:
        block_rows = rows
        # Megacore (v7x): give the grid >= 2 parallel steps for non-trivial
        # copies so both TensorCores' HBM paths are used.  Harmless on
        # v5e/v6e (single TC).
        if total_bytes >= 2 * _MiB and rows >= 2 * row_mult:
            half = ((rows + 1) // 2 + row_mult - 1) // row_mult * row_mult
            block_rows = min(half, rows)

    grid = (pl.cdiv(rows, block_rows),)

    out2d = pl.pallas_call(
        _copy_kernel,
        out_shape=jax.ShapeDtypeStruct((rows, cols), dtype),
        grid=grid,
        in_specs=[pl.BlockSpec((block_rows, cols), lambda i: (i, 0))],
        out_specs=pl.BlockSpec((block_rows, cols), lambda i: (i, 0)),
        # Identity: old and new values are identical, so aliasing the input
        # buffer is safe and avoids an extra HBM allocation when donated.
        input_output_aliases={0: 0},
        cost_estimate=cost,
        compiler_params=pltpu.CompilerParams(
            dimension_semantics=("parallel",),
            vmem_limit_bytes=vmem_limit,
        ),
    )(x2d)

    return out2d.reshape(orig_shape)


def fake_fn_identity(x, *, force_kernel=False):
    """FakeFn()(x) with the default fn = identity.

    Default is a zero-cost pass-through (no kernel launch, no HBM traffic);
    force_kernel=True routes through the Pallas copy kernel when an explicit
    custom-call boundary is wanted.
    """
    if not force_kernel:
        return x
    return fake_fn_identity_kernel(x)


class FakeFnPallas:
    """Mirror of the PyTorch FakeFn module.

    Default fn is identity -> free pass-through.  A custom fn (as in the
    PyTorch version) is applied as-is.  force_kernel=True keeps a Pallas
    custom-call boundary on the identity path.
    """

    def __init__(self, fn=None, force_kernel=False):
        self.fn = fn
        self.force_kernel = force_kernel

    def __call__(self, *x):
        if self.fn is not None:
            return self.fn(*x)
        outs = tuple(
            fake_fn_identity(xi, force_kernel=self.force_kernel) for xi in x
        )
        return outs[0] if len(outs) == 1 else outs


if __name__ == "__main__":
    key = jax.random.PRNGKey(0)
    # Small NCHW-like input consistent with FakeFn used as a pass-through
    # wrapper in checkpointed sequential models.
    x = jax.random.normal(key, (2, 4, 16, 16), dtype=jnp.float32)

    # Default FakeFn: fn = identity -> zero-cost pass-through (no kernel).
    module = FakeFnPallas()
    y = jax.block_until_ready(module(x))
    assert y.shape == x.shape and y.dtype == x.dtype
    assert bool(jnp.all(y == x))

    # Forced custom-call boundary: runs the Pallas aliased copy kernel.
    module_k = FakeFnPallas(force_kernel=True)
    yk = jax.block_until_ready(module_k(x))
    assert yk.shape == x.shape and yk.dtype == x.dtype
    assert bool(jnp.all(yk == x))

    # Flat size not a multiple of 128 -> single full-extent block path.
    x2 = jax.random.normal(jax.random.PRNGKey(1), (3, 5, 7), dtype=jnp.float32)
    y2 = jax.block_until_ready(fake_fn_identity_kernel(x2))
    assert bool(jnp.all(y2 == x2))

    # bf16 -> dtype-aware packed sublane granularity.
    x3 = jax.random.normal(jax.random.PRNGKey(2), (2, 8, 32), dtype=jnp.bfloat16)
    y3 = jax.block_until_ready(fake_fn_identity_kernel(x3))
    assert y3.dtype == jnp.bfloat16 and bool(jnp.all(y3 == x3))

    print("KERNEL_OK")
</pallas_src>

<mosaic_0001>
module attributes {stable_mosaic.version = 11 : i64} {
  func.func @_copy_kernel(%arg0: i32, %arg1: memref<8x256xf32, #tpu.memory_space<vmem>>, %arg2: memref<8x256xf32, #tpu.memory_space<vmem>>) attributes {dimension_semantics = [#tpu.dimension_semantics<parallel>], iteration_bounds = array<i64: 1>, scalar_prefetch = 0 : i64, scratch_operands = 0 : i64, tpu.core_type = #tpu.core_type<tc>, window_params = [{transform_indices = @transform_0, window_bounds = array<i64: 8, 256>}, {transform_indices = @transform_1, window_bounds = array<i64: 8, 256>}]} {
    %c0 = arith.constant 0 : index
    %c0_0 = arith.constant 0 : index
    %0 = vector.load %arg1[%c0, %c0_0] : memref<8x256xf32, #tpu.memory_space<vmem>>, vector<8x256xf32>
    %c0_1 = arith.constant 0 : index
    %c0_2 = arith.constant 0 : index
    %1 = vector.load %arg2[%c0_1, %c0_2] : memref<8x256xf32, #tpu.memory_space<vmem>>, vector<8x256xf32>
    tpu.vector_store %arg2[%c0_1, %c0_2], %0 {strides = array<i32>} : memref<8x256xf32, #tpu.memory_space<vmem>>, vector<8x256xf32>,
    return
  }
  func.func @transform_0(%arg0: i32) -> (i32, i32) {
    %c0_i32 = arith.constant 0 : i32
    %c0_i32_0 = arith.constant 0 : i32
    return %arg0, %c0_i32 : i32, i32
  }
  func.func @transform_1(%arg0: i32) -> (i32, i32) {
    %c0_i32 = arith.constant 0 : i32
    %c0_i32_0 = arith.constant 0 : i32
    return %arg0, %c0_i32 : i32, i32
  }
}

</mosaic_0001>

<bundles_post_ra>
// kernel: fake_fn_identity_kernel.1
= control target key start
LH: loop header
LB: loop body
LE: loop exit
PB: predicated region body
PF: predicated region fallthrough
CT: control target
= control target key end

     0   :  { %s38_s0 = inlined_call_operand.vmem [shape: f32[8,256], index: 0, kind: input, shape index: {}, may-alias: {0,1}]   ;;  %s39_s1 = inlined_call_operand.vmem [shape: f32[8,256], index: 1, kind: output, shape index: {}, may-alias: {0,1}]  }
   0x1   :  { %v8_v0 = vld [vmem:[%s38_s0] sm:$0xff]  ;;  %v9_v1 = vld [vmem:[%s38_s0 + $0x8] sm:$0xff] }
   0x2   :  { %10 = vst [vmem:[%s39_s1] sm:$0xff] %v8_v0  ;;  %11 = vst [vmem:[%s39_s1 + $0x8] sm:$0xff] %v9_v1 }

</bundles_post_ra>
